<compile_context>
chip_gen: v5e
topology: v5e:2x2
jax: 0.10.0
libtpu: 0.0.40
codegen_flags: <defaults>
</compile_context>

<pallas_src>
import functools

import jax
import jax.numpy as jnp
from jax.experimental import pallas as pl
from jax.experimental.pallas import tpu as pltpu

LANES = 128  # vreg lane width
EPS = 1e-6   # RMSELoss default eps


def _rmse_kernel(yhat_ref, y_ref, o_ref, acc_ref, *, inv_n, eps):
    step = pl.program_id(0)

    @pl.when(step == 0)
    def _init():
        acc_ref[...] = jnp.zeros_like(acc_ref)

    d = yhat_ref[...] - y_ref[...]                       # f32, lane-dense tile
    acc_ref[...] += jnp.sum(d * d, keepdims=True)        # (1, 1) partial SSE

    @pl.when(step == pl.num_programs(0) - 1)
    def _finalize():
        mse = acc_ref[...] * jnp.float32(inv_n)
        o_ref[...] = jnp.sqrt(mse + jnp.float32(eps))


def rmse_loss(yhat, y, eps=EPS, block_rows=512):
    """sqrt(mean((yhat - y)**2) + eps) computed in a single Pallas kernel."""
    assert yhat.shape == y.shape, "yhat and y must have the same shape"
    n_elem = int(yhat.size)

    # Pack into a lane-dense (padded_rows, 128) f32 slab.
    rows = -(-n_elem // LANES)                           # ceil
    block_rows = min(block_rows, ((rows + 7) // 8) * 8)  # sublane-aligned tile
    padded_rows = -(-rows // block_rows) * block_rows
    pad = padded_rows * LANES - n_elem

    def _prep(a):
        a = a.reshape(-1).astype(jnp.float32)
        if pad:
            a = jnp.pad(a, (0, pad))                     # identical pad -> diff 0
        return a.reshape(padded_rows, LANES)

    yhat2d = _prep(yhat)
    y2d = _prep(y)

    grid = (padded_rows // block_rows,)
    in_spec = pl.BlockSpec((block_rows, LANES), lambda i: (i, 0))

    out = pl.pallas_call(
        functools.partial(_rmse_kernel, inv_n=1.0 / n_elem, eps=float(eps)),
        out_shape=jax.ShapeDtypeStruct((1, 1), jnp.float32),
        grid=grid,
        in_specs=[in_spec, in_spec],
        out_specs=pl.BlockSpec((1, 1), lambda i: (0, 0)),     # resident accumulator-style output
        scratch_shapes=[pltpu.VMEM((1, 1), jnp.float32)],
        compiler_params=pltpu.CompilerParams(
            dimension_semantics=("arbitrary",)),              # reduction axis
    )(yhat2d, y2d)
    return out[0, 0]


if __name__ == "__main__":
    key = jax.random.PRNGKey(0)
    k_pred, k_tgt = jax.random.split(key)

    # 6 target columns: cohesion, syntax, vocabulary, phraseology, grammar, conventions
    B, C = 16, 6
    yhat = jax.random.normal(k_pred, (B, C), dtype=jnp.float32) + 3.0   # model predictions
    y = jax.random.uniform(k_tgt, (B, C), dtype=jnp.float32,            # score targets in [1, 5]
                           minval=1.0, maxval=5.0)

    loss = jax.jit(rmse_loss)(yhat, y)
    jax.block_until_ready(loss)

    ref = jnp.sqrt(jnp.mean((yhat - y) ** 2) + EPS)
    assert loss.shape == ()
    assert loss.dtype == jnp.float32
    assert jnp.allclose(loss, ref, rtol=1e-5, atol=1e-6)
    print("KERNEL_OK")
</pallas_src>

<mosaic_0001>
module attributes {stable_mosaic.version = 11 : i64} {
  func.func @_rmse_kernel(%arg0: i32, %arg1: memref<8x128xf32, #tpu.memory_space<vmem>>, %arg2: memref<8x128xf32, #tpu.memory_space<vmem>>, %arg3: memref<1x1xf32, #tpu.memory_space<vmem>>, %arg4: memref<1x1xf32, #tpu.memory_space<vmem>>) attributes {dimension_semantics = [#tpu.dimension_semantics<arbitrary>], iteration_bounds = array<i64: 1>, scalar_prefetch = 0 : i64, scratch_operands = 1 : i64, tpu.core_type = #tpu.core_type<tc>, window_params = [{transform_indices = @transform_0, window_bounds = array<i64: 8, 128>}, {transform_indices = @transform_1, window_bounds = array<i64: 8, 128>}, {pipeline_mode = #tpu.pipeline_mode<synchronous>, transform_indices = @transform_2, window_bounds = array<i64: 1, 1>}]} {
    %c0_i32 = arith.constant 0 : i32
    %0 = arith.cmpi eq, %arg0, %c0_i32 : i32
    %1 = arith.extui %0 : i1 to i32
    %c0_i32_0 = arith.constant 0 : i32
    %2 = arith.cmpi ne, %1, %c0_i32_0 : i32
    scf.if %2 {
      %cst_10 = arith.constant 0.000000e+00 : f32
      %18 = vector.broadcast %cst_10 : f32 to vector<1x1xf32>
      %c0_11 = arith.constant 0 : index
      %c0_12 = arith.constant 0 : index
      %19 = vector.load %arg4[%c0_11, %c0_12] : memref<1x1xf32, #tpu.memory_space<vmem>>, vector<1x1xf32>
      tpu.vector_store %arg4[%c0_11, %c0_12], %18 {strides = array<i32>} : memref<1x1xf32, #tpu.memory_space<vmem>>, vector<1x1xf32>,
    } else {
    }
    %c0 = arith.constant 0 : index
    %c0_1 = arith.constant 0 : index
    %3 = vector.load %arg1[%c0, %c0_1] : memref<8x128xf32, #tpu.memory_space<vmem>>, vector<8x128xf32>
    %c0_2 = arith.constant 0 : index
    %c0_3 = arith.constant 0 : index
    %4 = vector.load %arg2[%c0_2, %c0_3] : memref<8x128xf32, #tpu.memory_space<vmem>>, vector<8x128xf32>
    %5 = arith.subf %3, %4 : vector<8x128xf32>
    %c0_4 = arith.constant 0 : index
    %c0_5 = arith.constant 0 : index
    %6 = vector.load %arg4[%c0_4, %c0_5] : memref<1x1xf32, #tpu.memory_space<vmem>>, vector<1x1xf32>
    %7 = arith.mulf %5, %5 : vector<8x128xf32>
    %8 = vector.shape_cast %7 : vector<8x128xf32> to vector<1x8x128xf32>
    %cst = arith.constant dense<0.000000e+00> : vector<1xf32>
    %9 = vector.multi_reduction <add>, %8, %cst [1, 2] : vector<1x8x128xf32> to vector<1xf32>
    %10 = vector.shape_cast %9 : vector<1xf32> to vector<1x1x1xf32>
    %11 = vector.extract %10[0, 0, 0] : f32 from vector<1x1x1xf32>
    %12 = vector.broadcast %11 : f32 to vector<1x1xf32>
    %13 = arith.addf %6, %12 : vector<1x1xf32>
    %c0_6 = arith.constant 0 : index
    %c0_7 = arith.constant 0 : index
    %14 = vector.load %arg4[%c0_6, %c0_7] : memref<1x1xf32, #tpu.memory_space<vmem>>, vector<1x1xf32>
    tpu.vector_store %arg4[%c0_6, %c0_7], %13 {strides = array<i32>} : memref<1x1xf32, #tpu.memory_space<vmem>>, vector<1x1xf32>,
    %c0_i32_8 = arith.constant 0 : i32
    %15 = arith.cmpi eq, %arg0, %c0_i32_8 : i32
    %16 = arith.extui %15 : i1 to i32
    %c0_i32_9 = arith.constant 0 : i32
    %17 = arith.cmpi ne, %16, %c0_i32_9 : i32
    scf.if %17 {
      %c0_10 = arith.constant 0 : index
      %c0_11 = arith.constant 0 : index
      %18 = vector.load %arg4[%c0_10, %c0_11] : memref<1x1xf32, #tpu.memory_space<vmem>>, vector<1x1xf32>
      %cst_12 = arith.constant 0.010416667 : f32
      %19 = vector.broadcast %cst_12 : f32 to vector<1x1xf32>
      %20 = arith.mulf %18, %19 : vector<1x1xf32>
      %cst_13 = arith.constant 9.99999997E-7 : f32
      %21 = vector.broadcast %cst_13 : f32 to vector<1x1xf32>
      %22 = arith.addf %20, %21 : vector<1x1xf32>
      %23 = math.sqrt %22 : vector<1x1xf32>
      %c0_14 = arith.constant 0 : index
      %c0_15 = arith.constant 0 : index
      %24 = vector.load %arg3[%c0_14, %c0_15] : memref<1x1xf32, #tpu.memory_space<vmem>>, vector<1x1xf32>
      tpu.vector_store %arg3[%c0_14, %c0_15], %23 {strides = array<i32>} : memref<1x1xf32, #tpu.memory_space<vmem>>, vector<1x1xf32>,
    } else {
    }
    return
  }
  func.func @transform_0(%arg0: i32) -> (i32, i32) {
    %c0_i32 = arith.constant 0 : i32
    %c0_i32_0 = arith.constant 0 : i32
    return %arg0, %c0_i32 : i32, i32
  }
  func.func @transform_1(%arg0: i32) -> (i32, i32) {
    %c0_i32 = arith.constant 0 : i32
    %c0_i32_0 = arith.constant 0 : i32
    return %arg0, %c0_i32 : i32, i32
  }
  func.func @transform_2(%arg0: i32) -> (i32, i32) {
    %c0_i32 = arith.constant 0 : i32
    %c0_i32_0 = arith.constant 0 : i32
    %c0_i32_1 = arith.constant 0 : i32
    return %c0_i32, %c0_i32_0 : i32, i32
  }
}

</mosaic_0001>

<bundles_post_ra>
// kernel: rmse_loss.1
= control target key start
LH: loop header
LB: loop body
LE: loop exit
PB: predicated region body
PF: predicated region fallthrough
CT: control target
= control target key end

     0   :  { %s132_s0 = inlined_call_operand.vmem [shape: f32[8,128], index: 0, kind: input, shape index: {}]   ;;  %s133_s1 = inlined_call_operand.vmem [shape: f32[8,128], index: 1, kind: input, shape index: {}]   ;;  %s134_s2 = inlined_call_operand.hbm [shape: f32[1,1], index: 2, kind: output, shape index: {}]  }
   0x1   :  { %v18_v0 = vld [vmem:[%s132_s0] sm:$0xff] }
   0x2   :  { %v19_v1 = vld [vmem:[%s133_s1] sm:$0xff] }
   0x3   :  { %7 = vsyncpa [#allocation4], 0  ;;  %v20_v2 = vsub.f32 %v18_v0, %v19_v1  ;;  %vm16_vm0 = vcmask 0   ;;  %v103_v4 = vmov 0.0   ;;  %s104_s1 = smov [#allocation3]   ;;  %s62_s16 = sshll.u32 %s134_s2, 4  ;;  %s63_s16 = int_to_ptr.hbm [resolvable:$true] %s62_s16 }
   0x4   :  { %17 = vst.msk [vmem:[#allocation2] sm:$0x1] %vm16_vm0, %v103_v4  ;;  %s60_s13 = sshll.u32 %s104_s1, 4  ;;  %s61_s13 = int_to_ptr.vmem [resolvable:$true] %s60_s13 }
   0x5   :  { %v22_v3 = vmul.f32 %v20_v2, %v20_v2 }
   0x7   :  { %23 = vadd.xlane.f32.xlu0 %v22_v3 }
   0xb   :  { %v21_v12 = vld [vmem:[#allocation2] sm:$0x1] }
  0x7a   :  { %v24_v5 = vpop.xlane.xlu0 %23 }
  0x7b   :  { %v25_v6 = vrot.slane %v24_v5, 4 }
  0x7d   :  { %v26_v7 = vadd.f32 %v25_v6, %v24_v5 }
  0x7f   :  { %v27_v8 = vrot.slane %v26_v7, 2 }
  0x81   :  { %v28_v9 = vadd.f32 %v27_v8, %v26_v7 }
  0x83   :  { %v29_v10 = vrot.slane %v28_v9, 1 }
  0x85   :  { %v30_v11 = vadd.f32 %v29_v10, %v28_v9 }
  0x87   :  { %71 = vpush %v30_v11 }
  0xb8   :  { %s72_s0 = spop %71 }
  0xb9   :  { %v32_v13 = vstv %s72_s0 }
  0xba   :  { %v33_v14 = vadd.f32 %v32_v13, %v21_v12 }
  0xbc   :  { %35 = vst.msk [vmem:[#allocation2] sm:$0x1] %vm16_vm0, %v33_v14 }
  0xc3   :  { %v39_v15 = vld [vmem:[#allocation2] sm:$0x1] }
  0xc4   :  { %v40_v16 = vmul.f32 0.010416667, %v39_v15 }
  0xc6   :  { %v41_v17 = vadd.f32 1e-06, %v40_v16 }
  0xc8   :  { %75 = vrsqrt.f32 %v41_v17  ;;  %vm49_vm1 = vcmp.eq.f32.partialorder %v41_v17, inf  ;;  %v52_v25 = vand.u32 2147483648, %v41_v17  ;;  %vm51_vm2 = vcmp.eq.f32.partialorder %v41_v17, 0.0 }
  0xce   :  { %v76_v18 = vpop.eup %75 }
  0xcf   :  { %v43_v19 = vmul.f32 %v76_v18, %v41_v17 }
  0xd1   :  { %v44_v20 = vmul.f32 %v76_v18, %v43_v19 }
  0xd3   :  { %v45_v21 = vmul.f32 0.5, %v44_v20 }
  0xd5   :  { %v46_v22 = vsub.f32 1.5, %v45_v21 }
  0xd7   :  { %v47_v23 = vmul.f32 %v76_v18, %v46_v22 }
  0xd9   :  { %v48_v24 = vmul.f32 %v47_v23, %v41_v17 }
  0xdb   :  { %v50_v26 = vsel %vm49_vm1, %v41_v17, %v48_v24 }
  0xdc   :  { %v53_v27 = vsel %vm51_vm2, %v52_v25, %v50_v26 }
  0xdd   :  { %54 = vst.msk [vmem:[#allocation3] sm:$0x1] %vm16_vm0, %v53_v27 }
  0xde   :  { %65 = dma.vmem_to_hbm [thread:$0]  %s61_s13, 16, %s63_s16, [#allocation4]  }
  0xdf   :  { %101 = dma.done.wait [#allocation4], 16  }
  0xe0   :  { %102 = vsyncadd [#allocation4], 4294967280 }
  0xe1   :  { %70 = vsyncpa [#allocation4], 1 }

</bundles_post_ra>
